<compile_context>
chip_gen: v7x
topology: tpu7x:2x2x1
jax: 0.10.0
libtpu: 0.0.40
codegen_flags: <defaults>
</compile_context>

<pallas_src>
import functools

import jax
import jax.numpy as jnp
from jax.experimental import pallas as pl
from jax.experimental.pallas import tpu as pltpu

HIDDEN = 256


def _round_up(x, m):
    return ((x + m - 1) // m) * m


def _critic_kernel(sa_ref, w14_ref, b1_ref, w25_ref, b25_ref, w36_ref, b36_ref,
                   q_ref):
    """Twin-Q MLP forward for one batch tile. Weights stay VMEM-resident."""
    sa = sa_ref[...]  # (tb, in) bf16, cast done in the wrapper.

    # Fused layer 1 of both heads (W1 || W4): one MXU pass, f32 accumulation.
    h = jnp.dot(sa, w14_ref[...], preferred_element_type=jnp.float32)
    h = jnp.maximum(h + b1_ref[...], 0.0)

    # Split heads (static, 128-aligned lane slices).
    h1 = h[:, :HIDDEN].astype(jnp.bfloat16)
    h2 = h[:, HIDDEN:].astype(jnp.bfloat16)

    # Layer 2 per head; W25 = [W2 | W5] is one resident (256, 512) stream.
    g1 = jnp.maximum(
        jnp.dot(h1, w25_ref[:, :HIDDEN], preferred_element_type=jnp.float32)
        + b25_ref[:, :HIDDEN], 0.0)
    g2 = jnp.maximum(
        jnp.dot(h2, w25_ref[:, HIDDEN:], preferred_element_type=jnp.float32)
        + b25_ref[:, HIDDEN:], 0.0)

    # Layer 3: block-diag halves of W36 -> single lane-packed (tb, 2) store,
    # no in-kernel concat of g1||g2.
    q = (jnp.dot(g1.astype(jnp.bfloat16), w36_ref[:HIDDEN, :],
                 preferred_element_type=jnp.float32)
         + jnp.dot(g2.astype(jnp.bfloat16), w36_ref[HIDDEN:, :],
                   preferred_element_type=jnp.float32)
         + b36_ref[...])
    q_ref[...] = q.astype(q_ref.dtype)


@functools.partial(jax.jit, static_argnames=("batch_tile",))
def critic_forward(state, action, packed, *, batch_tile=1024):
    """Pallas implementation of Critic.forward -> (q1, q2), each (B, 1)."""
    B = state.shape[0]
    in_dim = state.shape[1] + action.shape[1]

    # Pre-concatenate + cast in the wrapper: the (B, in_dim) bf16 slab is tiny
    # (~2*in_dim bytes/row) and lets layer 1 be a single MXU pass.
    sa = jnp.concatenate([state, action], axis=1).astype(jnp.bfloat16)

    # Tile: multiple of 8 (sublane rule); at most ceil(B/2) so the grid has at
    # least 2 steps when B > 8 (both v7x TensorCores busy); large default tile
    # amortizes the ~0.35 us per-grid-step pipeline overhead.
    tb = min(batch_tile, max(8, _round_up((B + 1) // 2, 8)))
    grid = (pl.cdiv(B, tb),)

    def _tile(i):       # batch-blocked activations / output
        return (i, 0)

    def _resident(i):   # constant index map -> weight stays resident in VMEM
        return (0, 0)

    weight_order = ("w14", "b1", "w25", "b25", "w36", "b36")
    weights = [packed[k] for k in weight_order]

    in_specs = [pl.BlockSpec((tb, in_dim), _tile)]
    in_specs += [pl.BlockSpec(w.shape, _resident) for w in weights]

    weight_bytes = sum(int(w.size) * w.dtype.itemsize for w in weights)
    io_bytes = sa.size * 2 + B * 2 * 4
    flops = 2 * B * (in_dim * 2 * HIDDEN        # fused layer 1
                     + HIDDEN * 2 * HIDDEN      # layer 2 (both heads)
                     + HIDDEN * 2 * 2)          # layer 3 (both heads)

    # Only needed if someone asks for very large tiles (v5e scoped VMEM is
    # 16 MiB by default); the default tile's footprint is well under 1 MiB.
    vmem_limit = None
    if tb > 2048:
        vmem_limit = min(
            64 << 20,
            2 * tb * in_dim * 2 + 2 * tb * 2 * 4 + 2 * weight_bytes
            + tb * (512 + 256 + 256) * 4 + (4 << 20))

    q = pl.pallas_call(
        _critic_kernel,
        out_shape=jax.ShapeDtypeStruct((B, 2), jnp.float32),
        grid=grid,
        in_specs=in_specs,
        out_specs=pl.BlockSpec((tb, 2), _tile),
        compiler_params=pltpu.CompilerParams(
            dimension_semantics=("parallel",),
            vmem_limit_bytes=vmem_limit),
        cost_estimate=pl.CostEstimate(
            flops=flops, transcendentals=0,
            bytes_accessed=weight_bytes + io_bytes),
    )(sa, *weights)

    return q[:, 0:1], q[:, 1:2]


def init_critic_params(key, state_dim, action_dim):
    """torch.nn.Linear-style init (U(-1/sqrt(fan_in), +)); weights stored (in, out)."""
    in_dim = state_dim + action_dim
    dims = [(in_dim, HIDDEN), (HIDDEN, HIDDEN), (HIDDEN, 1),   # fc1..fc3
            (in_dim, HIDDEN), (HIDDEN, HIDDEN), (HIDDEN, 1)]   # fc4..fc6
    params = {}
    keys = jax.random.split(key, 2 * len(dims))
    for i, (fan_in, fan_out) in enumerate(dims):
        bound = 1.0 / float(fan_in) ** 0.5
        params[f"w{i + 1}"] = jax.random.uniform(
            keys[2 * i], (fan_in, fan_out), jnp.float32, -bound, bound)
        params[f"b{i + 1}"] = jax.random.uniform(
            keys[2 * i + 1], (1, fan_out), jnp.float32, -bound, bound)
    return params


def pack_critic_params(params):
    """Fuse + quantize params into the layout the kernel consumes.

    Layer 1: W14 = [W1 | W4] (in, 512).
    Layer 2: W25 = [W2 | W5] (256, 512), b25 = [b2 | b5].
    Layer 3: W36 = block_diag(w3, w6) (512, 2), b36 = [b3 | b6]; the kernel
             uses its two 256-row halves so no in-kernel concat is needed.
    Weights are bf16 (kernel accumulates in f32); biases stay f32.
    """
    w14 = jnp.concatenate([params["w1"], params["w4"]], axis=1)        # (in, 512)
    w25 = jnp.concatenate([params["w2"], params["w5"]], axis=1)        # (256, 512)
    zeros = jnp.zeros((HIDDEN, 1), jnp.float32)
    w36 = jnp.concatenate(
        [jnp.concatenate([params["w3"], zeros], axis=1),               # [w3 | 0]
         jnp.concatenate([zeros, params["w6"]], axis=1)], axis=0)      # [0 | w6]
    return dict(
        w14=w14.astype(jnp.bfloat16),
        b1=jnp.concatenate([params["b1"], params["b4"]], axis=1),      # (1, 512)
        w25=w25.astype(jnp.bfloat16),
        b25=jnp.concatenate([params["b2"], params["b5"]], axis=1),     # (1, 512)
        w36=w36.astype(jnp.bfloat16),                                  # (512, 2)
        b36=jnp.concatenate([params["b3"], params["b6"]], axis=1),     # (1, 2)
    )


def critic_forward_ref(state, action, packed):
    """Pure-JAX reference with the same bf16-weight / f32-accumulate numerics."""
    sa = jnp.concatenate([state, action], axis=1).astype(jnp.bfloat16)
    h = jnp.dot(sa, packed["w14"], preferred_element_type=jnp.float32) + packed["b1"]
    h = jnp.maximum(h, 0.0)
    h1 = h[:, :HIDDEN].astype(jnp.bfloat16)
    h2 = h[:, HIDDEN:].astype(jnp.bfloat16)
    g1 = jnp.maximum(
        jnp.dot(h1, packed["w25"][:, :HIDDEN], preferred_element_type=jnp.float32)
        + packed["b25"][:, :HIDDEN], 0.0)
    g2 = jnp.maximum(
        jnp.dot(h2, packed["w25"][:, HIDDEN:], preferred_element_type=jnp.float32)
        + packed["b25"][:, HIDDEN:], 0.0)
    q = (jnp.dot(g1.astype(jnp.bfloat16), packed["w36"][:HIDDEN],
                 preferred_element_type=jnp.float32)
         + jnp.dot(g2.astype(jnp.bfloat16), packed["w36"][HIDDEN:],
                   preferred_element_type=jnp.float32)
         + packed["b36"])
    return q[:, 0:1], q[:, 1:2]


if __name__ == "__main__":
    key = jax.random.PRNGKey(0)
    k_params, k_state, k_action = jax.random.split(key, 3)

    B, state_dim, action_dim = 8, 16, 4
    params = init_critic_params(k_params, state_dim, action_dim)
    packed = pack_critic_params(params)

    state = jax.random.normal(k_state, (B, state_dim), jnp.float32)
    action = jax.random.normal(k_action, (B, action_dim), jnp.float32)

    q1, q2 = critic_forward(state, action, packed)
    q1 = jax.block_until_ready(q1)
    q2 = jax.block_until_ready(q2)

    q1_ref, q2_ref = critic_forward_ref(state, action, packed)
    assert q1.shape == (B, 1) and q2.shape == (B, 1)
    assert jnp.allclose(q1, q1_ref, atol=5e-3, rtol=5e-3)
    assert jnp.allclose(q2, q2_ref, atol=5e-3, rtol=5e-3)

    # Exercise the batch grid: multiple tiles + a partial last tile.
    B2 = 40
    k_s2, k_a2 = jax.random.split(jax.random.PRNGKey(1))
    state2 = jax.random.normal(k_s2, (B2, state_dim), jnp.float32)
    action2 = jax.random.normal(k_a2, (B2, action_dim), jnp.float32)
    q1b, q2b = critic_forward(state2, action2, packed, batch_tile=16)
    q1b = jax.block_until_ready(q1b)
    q2b = jax.block_until_ready(q2b)
    q1b_ref, q2b_ref = critic_forward_ref(state2, action2, packed)
    assert jnp.allclose(q1b, q1b_ref, atol=5e-3, rtol=5e-3)
    assert jnp.allclose(q2b, q2b_ref, atol=5e-3, rtol=5e-3)

    print("KERNEL_OK")
</pallas_src>

<mosaic_0001>
module attributes {stable_mosaic.version = 11 : i64} {
  func.func @_critic_kernel(%arg0: i32, %arg1: memref<8x20xbf16, #tpu.memory_space<vmem>>, %arg2: memref<20x512xbf16, #tpu.memory_space<vmem>>, %arg3: memref<1x512xf32, #tpu.memory_space<vmem>>, %arg4: memref<256x512xbf16, #tpu.memory_space<vmem>>, %arg5: memref<1x512xf32, #tpu.memory_space<vmem>>, %arg6: memref<512x2xbf16, #tpu.memory_space<vmem>>, %arg7: memref<1x2xf32, #tpu.memory_space<vmem>>, %arg8: memref<8x2xf32, #tpu.memory_space<vmem>>) attributes {dimension_semantics = [#tpu.dimension_semantics<parallel>], iteration_bounds = array<i64: 1>, scalar_prefetch = 0 : i64, scratch_operands = 0 : i64, tpu.core_type = #tpu.core_type<tc>, window_params = [{transform_indices = @transform_0, window_bounds = array<i64: 8, 20>}, {pipeline_mode = #tpu.pipeline_mode<synchronous>, transform_indices = @transform_1, window_bounds = array<i64: 20, 512>}, {pipeline_mode = #tpu.pipeline_mode<synchronous>, transform_indices = @transform_2, window_bounds = array<i64: 1, 512>}, {pipeline_mode = #tpu.pipeline_mode<synchronous>, transform_indices = @transform_3, window_bounds = array<i64: 256, 512>}, {pipeline_mode = #tpu.pipeline_mode<synchronous>, transform_indices = @transform_4, window_bounds = array<i64: 1, 512>}, {pipeline_mode = #tpu.pipeline_mode<synchronous>, transform_indices = @transform_5, window_bounds = array<i64: 512, 2>}, {pipeline_mode = #tpu.pipeline_mode<synchronous>, transform_indices = @transform_6, window_bounds = array<i64: 1, 2>}, {transform_indices = @transform_7, window_bounds = array<i64: 8, 2>}]} {
    %c0 = arith.constant 0 : index
    %c0_0 = arith.constant 0 : index
    %0 = vector.load %arg1[%c0, %c0_0] : memref<8x20xbf16, #tpu.memory_space<vmem>>, vector<8x20xbf16>
    %c0_1 = arith.constant 0 : index
    %c0_2 = arith.constant 0 : index
    %1 = vector.load %arg2[%c0_1, %c0_2] : memref<20x512xbf16, #tpu.memory_space<vmem>>, vector<20x512xbf16>
    %cst = arith.constant dense<0.000000e+00> : vector<8x512xf32>
    %2 = tpu.matmul %0, %1, %cst {dimension_numbers = #tpu.dot_dimension_numbers<[1], [0], [0], [1], [0, 0, 1, 1], [], []>} : vector<8x20xbf16>, vector<20x512xbf16>, vector<8x512xf32> -> vector<8x512xf32>
    %c0_3 = arith.constant 0 : index
    %c0_4 = arith.constant 0 : index
    %3 = vector.load %arg3[%c0_3, %c0_4] : memref<1x512xf32, #tpu.memory_space<vmem>>, vector<1x512xf32>
    %4 = vector.broadcast %3 : vector<1x512xf32> to vector<8x512xf32>
    %5 = arith.addf %2, %4 : vector<8x512xf32>
    %cst_5 = arith.constant 0.000000e+00 : f32
    %6 = vector.broadcast %cst_5 : f32 to vector<8x512xf32>
    %7 = arith.maximumf %5, %6 : vector<8x512xf32>
    %8 = vector.extract_strided_slice %7 {offsets = [0, 0], sizes = [8, 256], strides = [1, 1]} : vector<8x512xf32> to vector<8x256xf32>
    %9 = arith.truncf %8 : vector<8x256xf32> to vector<8x256xbf16>
    %10 = vector.extract_strided_slice %7 {offsets = [0, 256], sizes = [8, 256], strides = [1, 1]} : vector<8x512xf32> to vector<8x256xf32>
    %11 = arith.truncf %10 : vector<8x256xf32> to vector<8x256xbf16>
    %c0_6 = arith.constant 0 : index
    %c0_7 = arith.constant 0 : index
    %12 = vector.load %arg4[%c0_6, %c0_7] : memref<256x512xbf16, #tpu.memory_space<vmem>>, vector<256x256xbf16>
    %cst_8 = arith.constant dense<0.000000e+00> : vector<8x256xf32>
    %13 = tpu.matmul %9, %12, %cst_8 {dimension_numbers = #tpu.dot_dimension_numbers<[1], [0], [0], [1], [0, 0, 1, 1], [], []>} : vector<8x256xbf16>, vector<256x256xbf16>, vector<8x256xf32> -> vector<8x256xf32>
    %c0_9 = arith.constant 0 : index
    %c0_10 = arith.constant 0 : index
    %14 = vector.load %arg5[%c0_9, %c0_10] : memref<1x512xf32, #tpu.memory_space<vmem>>, vector<1x256xf32>
    %15 = vector.broadcast %14 : vector<1x256xf32> to vector<8x256xf32>
    %16 = arith.addf %13, %15 : vector<8x256xf32>
    %cst_11 = arith.constant 0.000000e+00 : f32
    %17 = vector.broadcast %cst_11 : f32 to vector<8x256xf32>
    %18 = arith.maximumf %16, %17 : vector<8x256xf32>
    %c0_12 = arith.constant 0 : index
    %c256 = arith.constant 256 : index
    %19 = vector.load %arg4[%c0_12, %c256] : memref<256x512xbf16, #tpu.memory_space<vmem>>, vector<256x256xbf16>
    %cst_13 = arith.constant dense<0.000000e+00> : vector<8x256xf32>
    %20 = tpu.matmul %11, %19, %cst_13 {dimension_numbers = #tpu.dot_dimension_numbers<[1], [0], [0], [1], [0, 0, 1, 1], [], []>} : vector<8x256xbf16>, vector<256x256xbf16>, vector<8x256xf32> -> vector<8x256xf32>
    %c0_14 = arith.constant 0 : index
    %c256_15 = arith.constant 256 : index
    %21 = vector.load %arg5[%c0_14, %c256_15] : memref<1x512xf32, #tpu.memory_space<vmem>>, vector<1x256xf32>
    %22 = vector.broadcast %21 : vector<1x256xf32> to vector<8x256xf32>
    %23 = arith.addf %20, %22 : vector<8x256xf32>
    %cst_16 = arith.constant 0.000000e+00 : f32
    %24 = vector.broadcast %cst_16 : f32 to vector<8x256xf32>
    %25 = arith.maximumf %23, %24 : vector<8x256xf32>
    %26 = arith.truncf %18 : vector<8x256xf32> to vector<8x256xbf16>
    %c0_17 = arith.constant 0 : index
    %c0_18 = arith.constant 0 : index
    %27 = vector.load %arg6[%c0_17, %c0_18] : memref<512x2xbf16, #tpu.memory_space<vmem>>, vector<256x2xbf16>
    %cst_19 = arith.constant dense<0.000000e+00> : vector<8x2xf32>
    %28 = tpu.matmul %26, %27, %cst_19 {dimension_numbers = #tpu.dot_dimension_numbers<[1], [0], [0], [1], [0, 0, 1, 1], [], []>} : vector<8x256xbf16>, vector<256x2xbf16>, vector<8x2xf32> -> vector<8x2xf32>
    %29 = arith.truncf %25 : vector<8x256xf32> to vector<8x256xbf16>
    %c256_20 = arith.constant 256 : index
    %c0_21 = arith.constant 0 : index
    %30 = vector.load %arg6[%c256_20, %c0_21] : memref<512x2xbf16, #tpu.memory_space<vmem>>, vector<256x2xbf16>
    %cst_22 = arith.constant dense<0.000000e+00> : vector<8x2xf32>
    %31 = tpu.matmul %29, %30, %cst_22 {dimension_numbers = #tpu.dot_dimension_numbers<[1], [0], [0], [1], [0, 0, 1, 1], [], []>} : vector<8x256xbf16>, vector<256x2xbf16>, vector<8x2xf32> -> vector<8x2xf32>
    %32 = arith.addf %28, %31 : vector<8x2xf32>
    %c0_23 = arith.constant 0 : index
    %c0_24 = arith.constant 0 : index
    %33 = vector.load %arg7[%c0_23, %c0_24] : memref<1x2xf32, #tpu.memory_space<vmem>>, vector<1x2xf32>
    %34 = vector.broadcast %33 : vector<1x2xf32> to vector<8x2xf32>
    %35 = arith.addf %32, %34 : vector<8x2xf32>
    %c0_25 = arith.constant 0 : index
    %c0_26 = arith.constant 0 : index
    %36 = vector.load %arg8[%c0_25, %c0_26] : memref<8x2xf32, #tpu.memory_space<vmem>>, vector<8x2xf32>
    tpu.vector_store %arg8[%c0_25, %c0_26], %35 {strides = array<i32>} : memref<8x2xf32, #tpu.memory_space<vmem>>, vector<8x2xf32>,
    return
  }
  func.func @transform_0(%arg0: i32) -> (i32, i32) {
    %c0_i32 = arith.constant 0 : i32
    %c0_i32_0 = arith.constant 0 : i32
    return %arg0, %c0_i32 : i32, i32
  }
  func.func @transform_1(%arg0: i32) -> (i32, i32) {
    %c0_i32 = arith.constant 0 : i32
    %c0_i32_0 = arith.constant 0 : i32
    %c0_i32_1 = arith.constant 0 : i32
    return %c0_i32, %c0_i32_0 : i32, i32
  }
  func.func @transform_2(%arg0: i32) -> (i32, i32) {
    %c0_i32 = arith.constant 0 : i32
    %c0_i32_0 = arith.constant 0 : i32
    %c0_i32_1 = arith.constant 0 : i32
    return %c0_i32, %c0_i32_0 : i32, i32
  }
  func.func @transform_3(%arg0: i32) -> (i32, i32) {
    %c0_i32 = arith.constant 0 : i32
    %c0_i32_0 = arith.constant 0 : i32
    %c0_i32_1 = arith.constant 0 : i32
    return %c0_i32, %c0_i32_0 : i32, i32
  }
  func.func @transform_4(%arg0: i32) -> (i32, i32) {
    %c0_i32 = arith.constant 0 : i32
    %c0_i32_0 = arith.constant 0 : i32
    %c0_i32_1 = arith.constant 0 : i32
    return %c0_i32, %c0_i32_0 : i32, i32
  }
  func.func @transform_5(%arg0: i32) -> (i32, i32) {
    %c0_i32 = arith.constant 0 : i32
    %c0_i32_0 = arith.constant 0 : i32
    %c0_i32_1 = arith.constant 0 : i32
    return %c0_i32, %c0_i32_0 : i32, i32
  }
  func.func @transform_6(%arg0: i32) -> (i32, i32) {
    %c0_i32 = arith.constant 0 : i32
    %c0_i32_0 = arith.constant 0 : i32
    %c0_i32_1 = arith.constant 0 : i32
    return %c0_i32, %c0_i32_0 : i32, i32
  }
  func.func @transform_7(%arg0: i32) -> (i32, i32) {
    %c0_i32 = arith.constant 0 : i32
    %c0_i32_0 = arith.constant 0 : i32
    return %arg0, %c0_i32 : i32, i32
  }
}

</mosaic_0001>

<bundles_post_ra>
// kernel: critic_forward.1
= control target key start
LH: loop header
LB: loop body
LE: loop exit
PB: predicated region body
PF: predicated region fallthrough
CT: control target
= control target key end

     0   :  { %12 = vsyncpa [#allocation3], 0  ;;  %s1375_s24 = smov [#allocation2]   ;;  %s1577_s0 = inlined_call_operand.vmem [shape: bf16[8,20], index: 0, kind: input, shape index: {}]   ;;  %s1578_s1 = inlined_call_operand.vmem [shape: bf16[20,512], index: 1, kind: input, shape index: {}]   ;;  %s1579_s2 = inlined_call_operand.vmem [shape: f32[1,512], index: 2, kind: input, shape index: {}]   ;;  %s1580_s3 = inlined_call_operand.hbm [shape: bf16[256,512], index: 3, kind: input, shape index: {}]   ;;  %s1581_s4 = inlined_call_operand.vmem [shape: f32[1,512], index: 4, kind: input, shape index: {}]   ;;  %s1582_s5 = inlined_call_operand.vmem [shape: bf16[512,2], index: 5, kind: input, shape index: {}]   ;;  %s1583_s6 = inlined_call_operand.vmem [shape: f32[1,2], index: 6, kind: input, shape index: {}]   ;;  %s1584_s7 = inlined_call_operand.vmem [shape: f32[8,2], index: 7, kind: output, shape index: {}]  }
   0x1   :  { %s24_s25 = sshll.u32 %s1375_s24, 4  ;;  %s1351_s28 = scalar_lea.hbm %s1580_s3, 8192  ;;  %s25_s25 = int_to_ptr.vmem [resolvable:$true] %s24_s25 }
   0x2   :  { %p1352_p0 = scmp.ne.s32.totalorder %s1580_s3, %s1351_s28  ;;  %p1355_p1 = scmp.lt.u32.totalorder %s1351_s28, %s1580_s3 }
   0x4   :  { %p1357_p2 = pnand %p1355_p1, %p1352_p0 }
   0x6   :  { %1360 = shalt.err (!%p1357_p2)
}
   0x7   :  { %s1361_s10 = scalar_lea.vmem %s25_s25, 8192  ;;  %p1366_p4 = scmp.lt.s32.totalorder %s25_s25, %s25_s25 }
   0x8   :  { %p1362_p3 = scmp.ne.s32.totalorder %s25_s25, %s1361_s10  ;;  %p1367_p5 = scmp.lt.s32.totalorder %s1361_s10, %s1361_s10 }
   0xa   :  { %p1368_p6 = por %p1367_p5, %p1366_p4 }
   0xc   :  { %p1369_p7 = pnand %p1368_p6, %p1362_p3 }
   0xe   :  { %1372 = shalt.err (!%p1369_p7)
}
   0xf   :  { %s1376_s11 = smov 256   ;;  %s1377_s12 = smov 16  }
  0x10   :  { %30 = dma.hbm_to_vmem [thread:$0]  %s1580_s3, 8192, %s25_s25, [#allocation3], %s1376_s11, %s1376_s11, %s1377_s12  }
  0x11   :  { %1373 = dma.done.wait [#allocation3], 8192  }
  0x12   :  { %1374 = vsyncadd [#allocation3], 4294959104  ;;  %v1378_v0 = vmov 0   ;;  %v1213_v1 = vld [vmem:[%s1578_s1 + $0x4] ss:$16 sps:$4 sm:$0xff]   ;;  %vm104_vm0 = vcmask 1041408  }
  0x13   :  { %149 = vmatprep.mubr.bf16.mxu0 %v1378_v0  ;;  %190 = vmatprep.mubr.bf16.mxu1 %v1378_v0  ;;  %v1215_v2 = vld [vmem:[%s1578_s1 + $0xc] ss:$16 sps:$4 sm:$0xff]   ;;  %v1217_v3 = vld [vmem:[%s1578_s1] ss:$16 sps:$4 sm:$0xff]   ;;  %v1218_v4 = vld [vmem:[%s1578_s1 + $0x8] ss:$16 sps:$4 sm:$0xff]  }
  0x14   :  { %117 = vmatprep.subr.bf16.mxu0 %v1213_v1  ;;  %v46_v5 = vld [vmem:[%s1578_s1 + $0x20] sm:$0x33]  ;;  %158 = vmatprep.subr.bf16.mxu1 %v1215_v2  ;;  %v47_v7 = vld [vmem:[%s1578_s1 + $0x28] sm:$0x33]  ;;  %vm100_vm1 = vcmask 162816   ;;  %vm1049_vm2 = vcmask 15360  }
  0x15   :  { %v1061_v6 = vcombine.high %v46_v5, %v46_v5  ;;  %v1060_v8 = vcombine.low %v46_v5, %v46_v5  ;;  %118 = vmatpush1.bf16.msra.mxu0 %v1217_v3  ;;  %159 = vmatpush1.bf16.msra.mxu1 %v1218_v4  ;;  %v1063_v9 = vcombine.high %v47_v7, %v47_v7  ;;  %v1225_v12 = vld [vmem:[#allocation2 + $0x4] ss:$16 sps:$4 sm:$0xff]   ;;  %v1228_v14 = vld [vmem:[#allocation2 + $0xc] ss:$16 sps:$4 sm:$0xff]   ;;  %v41_v15 = vld [vmem:[%s1577_s0] sm:$0xf] }
  0x16   :  { %v1062_v10 = vcombine.low %v47_v7, %v47_v7  ;;  %v1223_v16 = vld [vmem:[#allocation2] ss:$16 sps:$4 sm:$0xff]   ;;  %v1226_v17 = vld [vmem:[#allocation2 + $0x8] ss:$16 sps:$4 sm:$0xff]   ;;  %v1231_v18 = vld [vmem:[#allocation2 + $0x24] ss:$16 sps:$4 sm:$0xff]  }
  0x17   :  { %1064 = vmatprep.subr.msk.bf16.mxu0 %vm104_vm0, %v1061_v6  ;;  %v106_v11 = vsel %vm104_vm0, %v1060_v8, 0  ;;  %1066 = vmatprep.subr.msk.bf16.mxu1 %vm104_vm0, %v1063_v9  ;;  %v1234_v19 = vld [vmem:[#allocation2 + $0x2c] ss:$16 sps:$4 sm:$0xff]   ;;  %v1229_v20 = vld [vmem:[#allocation2 + $0x20] ss:$16 sps:$4 sm:$0xff]  }
  0x18   :  { %v112_v13 = vsel %vm104_vm0, %v1062_v10, 0  ;;  %v1232_v21 = vld [vmem:[#allocation2 + $0x28] ss:$16 sps:$4 sm:$0xff]   ;;  %v1237_v22 = vld [vmem:[#allocation2 + $0x44] ss:$16 sps:$4 sm:$0xff]  }
  0x19   :  { %120 = vmatpush1.bf16.msra.mxu0 %v106_v11  ;;  %161 = vmatpush1.bf16.msra.mxu1 %v112_v13  ;;  %v1240_v23 = vld [vmem:[#allocation2 + $0x4c] ss:$16 sps:$4 sm:$0xff]   ;;  %v1235_v24 = vld [vmem:[#allocation2 + $0x40] ss:$16 sps:$4 sm:$0xff]   ;;  %v1238_v25 = vld [vmem:[#allocation2 + $0x48] ss:$16 sps:$4 sm:$0xff]  }
  0x1a   :  { %411 = vmatprep.subr.bf16.mxu0 %v1225_v12  ;;  %658 = vmatprep.subr.bf16.mxu1 %v1228_v14  ;;  %v1243_v26 = vld [vmem:[#allocation2 + $0x64] ss:$16 sps:$4 sm:$0xff]   ;;  %v1246_v27 = vld [vmem:[#allocation2 + $0x6c] ss:$16 sps:$4 sm:$0xff]   ;;  %v1241_v28 = vld [vmem:[#allocation2 + $0x60] ss:$16 sps:$4 sm:$0xff]  }
  0x1b   :  { %v1244_v29 = vld [vmem:[#allocation2 + $0x68] ss:$16 sps:$4 sm:$0xff]   ;;  %v1249_v30 = vld [vmem:[#allocation2 + $0x84] ss:$16 sps:$4 sm:$0xff]   ;;  %v1252_v31 = vld [vmem:[#allocation2 + $0x8c] ss:$16 sps:$4 sm:$0xff]  }
  0x1c   :  { %1065 = vmatmul.mubr.msk.bf16.vlgmr.msra.gmra.mrb[0].mxu0 %vm100_vm1, %v41_v15  ;;  %1067 = vmatmul.mubr.msk.bf16.vlgmr.msra.gmra.mrb[0].mxu1 %vm100_vm1, %v41_v15  ;;  %v1247_v32 = vld [vmem:[#allocation2 + $0x80] ss:$16 sps:$4 sm:$0xff]   ;;  %v1250_v33 = vld [vmem:[#allocation2 + $0x88] ss:$16 sps:$4 sm:$0xff]   ;;  %v1255_v34 = vld [vmem:[#allocation2 + $0xa4] ss:$16 sps:$4 sm:$0xff]  }
  0x1d   :  { %412 = vmatpush1.bf16.msra.mxu0 %v1223_v16  ;;  %659 = vmatpush1.bf16.msra.mxu1 %v1226_v17  ;;  %v1258_v35 = vld [vmem:[#allocation2 + $0xac] ss:$16 sps:$4 sm:$0xff]   ;;  %v1253_v36 = vld [vmem:[#allocation2 + $0xa0] ss:$16 sps:$4 sm:$0xff]   ;;  %v1256_v37 = vld [vmem:[#allocation2 + $0xa8] ss:$16 sps:$4 sm:$0xff]   ;;  %v50_v16 = vlaneseq }
  0x1e   :  { %413 = vmatprep.subr.bf16.mxu0 %v1231_v18  ;;  %660 = vmatprep.subr.bf16.mxu1 %v1234_v19  ;;  %v1261_v38 = vld [vmem:[#allocation2 + $0xc4] ss:$16 sps:$4 sm:$0xff]   ;;  %v1264_v39 = vld [vmem:[#allocation2 + $0xcc] ss:$16 sps:$4 sm:$0xff]   ;;  %v1259_v40 = vld [vmem:[#allocation2 + $0xc0] ss:$16 sps:$4 sm:$0xff]  }
  0x1f   :  { %v1262_v41 = vld [vmem:[#allocation2 + $0xc8] ss:$16 sps:$4 sm:$0xff]   ;;  %v1267_v42 = vld [vmem:[#allocation2 + $0xe4] ss:$16 sps:$4 sm:$0xff]   ;;  %v1270_v43 = vld [vmem:[#allocation2 + $0xec] ss:$16 sps:$4 sm:$0xff]  }
  0x20   :  { %v1265_v44 = vld [vmem:[#allocation2 + $0xe0] ss:$16 sps:$4 sm:$0xff]   ;;  %v1268_v45 = vld [vmem:[#allocation2 + $0xe8] ss:$16 sps:$4 sm:$0xff]   ;;  %v1273_v46 = vld [vmem:[#allocation2 + $0x104] ss:$16 sps:$4 sm:$0xff]  }
  0x21   :  { %414 = vmatpush1.bf16.msra.mxu0 %v1229_v20  ;;  %661 = vmatpush1.bf16.msra.mxu1 %v1232_v21  ;;  %v1276_v47 = vld [vmem:[#allocation2 + $0x10c] ss:$16 sps:$4 sm:$0xff]   ;;  %v1271_v48 = vld [vmem:[#allocation2 + $0x100] ss:$16 sps:$4 sm:$0xff]   ;;  %v1274_v49 = vld [vmem:[#allocation2 + $0x108] ss:$16 sps:$4 sm:$0xff]  }
  0x22   :  { %415 = vmatprep.subr.bf16.mxu0 %v1237_v22  ;;  %662 = vmatprep.subr.bf16.mxu1 %v1240_v23  ;;  %v1279_v50 = vld [vmem:[#allocation2 + $0x124] ss:$16 sps:$4 sm:$0xff]   ;;  %v1282_v51 = vld [vmem:[#allocation2 + $0x12c] ss:$16 sps:$4 sm:$0xff]   ;;  %v1277_v52 = vld [vmem:[#allocation2 + $0x120] ss:$16 sps:$4 sm:$0xff]  }
  0x23   :  { %v1280_v53 = vld [vmem:[#allocation2 + $0x128] ss:$16 sps:$4 sm:$0xff]   ;;  %v1285_v54 = vld [vmem:[#allocation2 + $0x144] ss:$16 sps:$4 sm:$0xff]   ;;  %v1288_v55 = vld [vmem:[#allocation2 + $0x14c] ss:$16 sps:$4 sm:$0xff]  }
  0x24   :  { %v1283_v56 = vld [vmem:[#allocation2 + $0x140] ss:$16 sps:$4 sm:$0xff]   ;;  %v1286_v57 = vld [vmem:[#allocation2 + $0x148] ss:$16 sps:$4 sm:$0xff]   ;;  %v1291_v58 = vld [vmem:[#allocation2 + $0x164] ss:$16 sps:$4 sm:$0xff]  }
  0x25   :  { %416 = vmatpush1.bf16.msra.mxu0 %v1235_v24  ;;  %663 = vmatpush1.bf16.msra.mxu1 %v1238_v25  ;;  %v1294_v59 = vld [vmem:[#allocation2 + $0x16c] ss:$16 sps:$4 sm:$0xff]   ;;  %v1289_v60 = vld [vmem:[#allocation2 + $0x160] ss:$16 sps:$4 sm:$0xff]   ;;  %v1292_v61 = vld [vmem:[#allocation2 + $0x168] ss:$16 sps:$4 sm:$0xff]  }
  0x26   :  { %417 = vmatprep.subr.bf16.mxu0 %v1243_v26  ;;  %664 = vmatprep.subr.bf16.mxu1 %v1246_v27  ;;  %v1297_v62 = vld [vmem:[#allocation2 + $0x184] ss:$16 sps:$4 sm:$0xff]   ;;  %v1300_v63 = vld [vmem:[#allocation2 + $0x18c] ss:$16 sps:$4 sm:$0xff]   ;;  %v1295_v0 = vld [vmem:[#allocation2 + $0x180] ss:$16 sps:$4 sm:$0xff]  }
  0x27   :  { %v1298_v1 = vld [vmem:[#allocation2 + $0x188] ss:$16 sps:$4 sm:$0xff]   ;;  %v1303_v2 = vld [vmem:[#allocation2 + $0x1a4] ss:$16 sps:$4 sm:$0xff]   ;;  %v1306_v3 = vld [vmem:[#allocation2 + $0x1ac] ss:$16 sps:$4 sm:$0xff]  }
  0x28   :  { %v1301_v4 = vld [vmem:[#allocation2 + $0x1a0] ss:$16 sps:$4 sm:$0xff]   ;;  %v1304_v5 = vld [vmem:[#allocation2 + $0x1a8] ss:$16 sps:$4 sm:$0xff]   ;;  %v1309_v6 = vld [vmem:[#allocation2 + $0x1c4] ss:$16 sps:$4 sm:$0xff]  }
  0x29   :  { %418 = vmatpush1.bf16.msra.mxu0 %v1241_v28  ;;  %665 = vmatpush1.bf16.msra.mxu1 %v1244_v29  ;;  %v1312_v7 = vld [vmem:[#allocation2 + $0x1cc] ss:$16 sps:$4 sm:$0xff]   ;;  %v1307_v8 = vld [vmem:[#allocation2 + $0x1c0] ss:$16 sps:$4 sm:$0xff]   ;;  %v1310_v9 = vld [vmem:[#allocation2 + $0x1c8] ss:$16 sps:$4 sm:$0xff]  }
  0x2a   :  { %419 = vmatprep.subr.bf16.mxu0 %v1249_v30  ;;  %666 = vmatprep.subr.bf16.mxu1 %v1252_v31  ;;  %v1315_v10 = vld [vmem:[#allocation2 + $0x1e4] ss:$16 sps:$4 sm:$0xff]   ;;  %v1318_v11 = vld [vmem:[#allocation2 + $0x1ec] ss:$16 sps:$4 sm:$0xff]   ;;  %v1313_v12 = vld [vmem:[#allocation2 + $0x1e0] ss:$16 sps:$4 sm:$0xff]  }
  0x2b   :  { %v1316_v13 = vld [vmem:[#allocation2 + $0x1e8] ss:$16 sps:$4 sm:$0xff]   ;;  %v1319_v14 = vld [vmem:[%s1582_s5 + $0xc0] sm:$0xff]   ;;  %v51_v17 = vshrl.u32 %v50_v16, 7 }
  0x2c   :  { %v1320_v15 = vld [vmem:[%s1582_s5 + $0x40] sm:$0xff]  }
  0x2d   :  { %420 = vmatpush1.bf16.msra.mxu0 %v1247_v32  ;;  %667 = vmatpush1.bf16.msra.mxu1 %v1250_v33  ;;  %v1462_v18 = vsub.s32 0, %v51_v17  ;;  %v60_v19 = vsub.s32 2, %v51_v17  ;;  %v48_v20 = vld [vmem:[%s1579_s2] sm:$0xf]  ;;  %v1467_v21 = vsub.s32 1, %v51_v17  ;;  %v64_v22 = vsub.s32 3, %v51_v17 }
  0x2e   :  { %421 = vmatprep.subr.bf16.mxu0 %v1255_v34  ;;  %668 = vmatprep.subr.bf16.mxu1 %v1258_v35 }
  0x2f   :  { %v53_v23 = vrot.slane %v48_v20, %v1462_v18  ;;  %v61_v24 = vrot.slane %v48_v20, %v60_v19  ;;  %v57_v25 = vrot.slane %v48_v20, %v1467_v21  ;;  %v65_v26 = vrot.slane %v48_v20, %v64_v22 }
  0x31   :  { %422 = vmatpush1.bf16.msra.mxu0 %v1253_v36  ;;  %669 = vmatpush1.bf16.msra.mxu1 %v1256_v37 }
  0x32   :  { %423 = vmatprep.subr.bf16.mxu0 %v1261_v38  ;;  %670 = vmatprep.subr.bf16.mxu1 %v1264_v39 }
  0x35   :  { %424 = vmatpush1.bf16.msra.mxu0 %v1259_v40  ;;  %671 = vmatpush1.bf16.msra.mxu1 %v1262_v41 }
  0x36   :  { %425 = vmatprep.subr.bf16.mxu0 %v1267_v42  ;;  %672 = vmatprep.subr.bf16.mxu1 %v1270_v43 }
  0x39   :  { %426 = vmatpush1.bf16.msra.mxu0 %v1265_v44  ;;  %673 = vmatpush1.bf16.msra.mxu1 %v1268_v45  ;;  %v1321_v45 = vld [vmem:[%s1582_s5 + $0x80] sm:$0xff]  }
  0x3a   :  { %427 = vmatprep.subr.bf16.mxu0 %v1273_v46  ;;  %674 = vmatprep.subr.bf16.mxu1 %v1276_v47  ;;  %v1322_v46 = vld [vmem:[%s1582_s5] sm:$0xff]  }
  0x3d   :  { %428 = vmatpush1.bf16.msra.mxu0 %v1271_v48  ;;  %675 = vmatpush1.bf16.msra.mxu1 %v1274_v49  ;;  %v1323_v49 = vld [vmem:[%s1582_s5 + $0xc8] sm:$0xff]  }
  0x3e   :  { %429 = vmatprep.subr.bf16.mxu0 %v1279_v50  ;;  %676 = vmatprep.subr.bf16.mxu1 %v1282_v51  ;;  %v1324_v50 = vld [vmem:[%s1582_s5 + $0x48] sm:$0xff]  }
  0x3f   :  { %v1325_v51 = vld [vmem:[%s1582_s5 + $0x88] sm:$0xff]  }
  0x41   :  { %430 = vmatpush1.bf16.msra.mxu0 %v1277_v52  ;;  %677 = vmatpush1.bf16.msra.mxu1 %v1280_v53  ;;  %v1326_v52 = vld [vmem:[%s1582_s5 + $0x8] sm:$0xff]   ;;  %v1327_v53 = vld [vmem:[%s1582_s5 + $0xd0] sm:$0xff]  }
  0x42   :  { %431 = vmatprep.subr.bf16.mxu0 %v1285_v54  ;;  %678 = vmatprep.subr.bf16.mxu1 %v1288_v55  ;;  %v1328_v54 = vld [vmem:[%s1582_s5 + $0x50] sm:$0xff]  }
  0x43   :  { %v1329_v55 = vld [vmem:[%s1582_s5 + $0x90] sm:$0xff]  }
  0x45   :  { %432 = vmatpush1.bf16.msra.mxu0 %v1283_v56  ;;  %679 = vmatpush1.bf16.msra.mxu1 %v1286_v57  ;;  %v1330_v56 = vld [vmem:[%s1582_s5 + $0x10] sm:$0xff]   ;;  %v1331_v57 = vld [vmem:[%s1582_s5 + $0xd8] sm:$0xff]  }
  0x46   :  { %433 = vmatprep.subr.bf16.mxu0 %v1291_v58  ;;  %680 = vmatprep.subr.bf16.mxu1 %v1294_v59  ;;  %v1332_v58 = vld [vmem:[%s1582_s5 + $0x58] sm:$0xff]  }
  0x47   :  { %v1333_v59 = vld [vmem:[%s1582_s5 + $0x98] sm:$0xff]  }
  0x49   :  { %434 = vmatpush1.bf16.msra.mxu0 %v1289_v60  ;;  %681 = vmatpush1.bf16.msra.mxu1 %v1292_v61  ;;  %v1334_v60 = vld [vmem:[%s1582_s5 + $0x18] sm:$0xff]   ;;  %v1335_v61 = vld [vmem:[%s1582_s5 + $0xe0] sm:$0xff]  }
  0x4a   :  { %435 = vmatprep.subr.bf16.mxu0 %v1297_v62  ;;  %682 = vmatprep.subr.bf16.mxu1 %v1300_v63  ;;  %v1336_v62 = vld [vmem:[%s1582_s5 + $0x60] sm:$0xff]  }
  0x4b   :  { %v1337_v63 = vld [vmem:[%s1582_s5 + $0xa0] sm:$0xff]  }
  0x4d   :  { %436 = vmatpush1.bf16.msra.mxu0 %v1295_v0  ;;  %683 = vmatpush1.bf16.msra.mxu1 %v1298_v1  ;;  %v1338_v0 = vld [vmem:[%s1582_s5 + $0x20] sm:$0xff]   ;;  %v1339_v1 = vld [vmem:[%s1582_s5 + $0xe8] sm:$0xff]  }
  0x4e   :  { %437 = vmatprep.subr.bf16.mxu0 %v1303_v2  ;;  %684 = vmatprep.subr.bf16.mxu1 %v1306_v3  ;;  %v1340_v2 = vld [vmem:[%s1582_s5 + $0x68] sm:$0xff]  }
  0x4f   :  { %v1341_v3 = vld [vmem:[%s1582_s5 + $0xa8] sm:$0xff]  }
  0x51   :  { %438 = vmatpush1.bf16.msra.mxu0 %v1301_v4  ;;  %685 = vmatpush1.bf16.msra.mxu1 %v1304_v5  ;;  %v1342_v4 = vld [vmem:[%s1582_s5 + $0x28] sm:$0xff]   ;;  %v1343_v5 = vld [vmem:[%s1582_s5 + $0xf0] sm:$0xff]  }
  0x52   :  { %439 = vmatprep.subr.bf16.mxu0 %v1309_v6  ;;  %686 = vmatprep.subr.bf16.mxu1 %v1312_v7  ;;  %v1344_v6 = vld [vmem:[%s1582_s5 + $0x70] sm:$0xff]  }
  0x53   :  { %v1345_v7 = vld [vmem:[%s1582_s5 + $0xb0] sm:$0xff]  }
  0x55   :  { %440 = vmatpush1.bf16.msra.mxu0 %v1307_v8  ;;  %687 = vmatpush1.bf16.msra.mxu1 %v1310_v9  ;;  %v1346_v8 = vld [vmem:[%s1582_s5 + $0x30] sm:$0xff]   ;;  %v1347_v9 = vld [vmem:[%s1582_s5 + $0xf8] sm:$0xff]  }
  0x56   :  { %441 = vmatprep.subr.bf16.mxu0 %v1315_v10  ;;  %688 = vmatprep.subr.bf16.mxu1 %v1318_v11  ;;  %v1348_v10 = vld [vmem:[%s1582_s5 + $0x78] sm:$0xff]  }
  0x57   :  { %v1349_v11 = vld [vmem:[%s1582_s5 + $0xb8] sm:$0xff]  }
  0x59   :  { %442 = vmatpush1.bf16.msra.mxu0 %v1313_v12  ;;  %689 = vmatpush1.bf16.msra.mxu1 %v1316_v13  ;;  %v1350_v12 = vld [vmem:[%s1582_s5 + $0x38] sm:$0xff]   ;;  %v239_v13 = vld [vmem:[%s1581_s4] sm:$0x3] }
  0x5a   :  { %1165 = vmatprep.subr.bf16.mxu0 %v1319_v14  ;;  %1187 = vmatprep.subr.bf16.mxu1 %v1320_v15  ;;  %v486_v14 = vld [vmem:[%s1581_s4 + $0x2] sm:$0x3]  ;;  %v244_v15 = vrot.slane %v239_v13, %v1462_v18  ;;  %v248_v17 = vrot.slane %v239_v13, %v1467_v21 }
  0x5b   :  { %v491_v16 = vrot.slane %v486_v14, %v1462_v18  ;;  %v495_v19 = vrot.slane %v486_v14, %v1467_v21 }
  0xef   :  { %v151_v27 = vpop.f32.mrb[0].mxu0  ;;  %v192_v28 = vpop.f32.mrb[0].mxu1 }
  0xf0   :  { %v152_v29 = vadd.f32 %v151_v27, %v53_v23  ;;  %v193_v30 = vadd.f32 %v192_v28, %v61_v24  ;;  %v153_v31 = vpop.f32.mrb[1].mxu0  ;;  %v194_v32 = vpop.f32.mrb[1].mxu1 }
  0xf1   :  { %v154_v33 = vadd.f32 %v153_v31, %v57_v25  ;;  %v195_v34 = vadd.f32 %v194_v32, %v65_v26  ;;  %v155_v35 = vpop.f32.mrb[2].mxu0  ;;  %v196_v36 = vpop.f32.mrb[2].mxu1 }
  0xf2   :  { %v199_v37 = vmax.f32 %v152_v29, 0.0  ;;  %v201_v38 = vmax.f32 %v193_v30, 0.0  ;;  %v156_v39 = vpop.f32.mrb[3].mxu0  ;;  %v197_v40 = vpop.f32.mrb[3].mxu1 }
  0xf3   :  { %v200_v41 = vmax.f32 %v154_v33, 0.0  ;;  %v202_v42 = vmax.f32 %v195_v34, 0.0 }
  0xf4   :  { %v203_v47 = vpack.c.bf16 %v199_v37, %v199_v37  ;;  %v205_v48 = vpack.c.bf16 %v201_v38, %v201_v38 }
  0xf5   :  { %v204_v43 = vpack.c.bf16 %v200_v41, %v200_v41  ;;  %v206_v44 = vpack.c.bf16 %v202_v42, %v202_v42 }
  0xf7   :  { %443 = vmatprep.mubr.bf16.mxu0 %v204_v43  ;;  %690 = vmatprep.mubr.bf16.mxu1 %v206_v44 }
  0xf8   :  { %444 = vmatmul.mubr.bf16.vlgmr.msra.gmra.mrb[4].mxu0 %v203_v47  ;;  %691 = vmatmul.mubr.bf16.vlgmr.msra.gmra.mrb[4].mxu1 %v205_v48  ;;  %v1164_v47 = vld [vmem:[%s1583_s6] ss:$0 sm:$0xff] }
  0xf9   :  { %1166 = vmatpush3.bf16.msra.mxu0 %v1321_v45  ;;  %1188 = vmatpush3.bf16.msra.mxu1 %v1322_v46 }
  0xfa   :  { %1167 = vmatprep.subr.bf16.mxu0 %v1323_v49  ;;  %1189 = vmatprep.subr.bf16.mxu1 %v1324_v50 }
  0xfd   :  { %1168 = vmatpush3.bf16.msra.mxu0 %v1325_v51  ;;  %1190 = vmatpush3.bf16.msra.mxu1 %v1326_v52 }
  0xfe   :  { %1169 = vmatprep.subr.bf16.mxu0 %v1327_v53  ;;  %1191 = vmatprep.subr.bf16.mxu1 %v1328_v54 }
 0x101   :  { %1170 = vmatpush3.bf16.msra.mxu0 %v1329_v55  ;;  %1192 = vmatpush3.bf16.msra.mxu1 %v1330_v56 }
 0x102   :  { %1171 = vmatprep.subr.bf16.mxu0 %v1331_v57  ;;  %1193 = vmatprep.subr.bf16.mxu1 %v1332_v58 }
 0x105   :  { %1172 = vmatpush3.bf16.msra.mxu0 %v1333_v59  ;;  %1194 = vmatpush3.bf16.msra.mxu1 %v1334_v60 }
 0x106   :  { %1173 = vmatprep.subr.bf16.mxu0 %v1335_v61  ;;  %1195 = vmatprep.subr.bf16.mxu1 %v1336_v62 }
 0x109   :  { %1174 = vmatpush3.bf16.msra.mxu0 %v1337_v63  ;;  %1196 = vmatpush3.bf16.msra.mxu1 %v1338_v0 }
 0x10a   :  { %1175 = vmatprep.subr.bf16.mxu0 %v1339_v1  ;;  %1197 = vmatprep.subr.bf16.mxu1 %v1340_v2 }
 0x10d   :  { %1176 = vmatpush3.bf16.msra.mxu0 %v1341_v3  ;;  %1198 = vmatpush3.bf16.msra.mxu1 %v1342_v4 }
 0x10e   :  { %1177 = vmatprep.subr.bf16.mxu0 %v1343_v5  ;;  %1199 = vmatprep.subr.bf16.mxu1 %v1344_v6 }
 0x111   :  { %1178 = vmatpush3.bf16.msra.mxu0 %v1345_v7  ;;  %1200 = vmatpush3.bf16.msra.mxu1 %v1346_v8 }
 0x112   :  { %1179 = vmatprep.subr.bf16.mxu0 %v1347_v9  ;;  %1201 = vmatprep.subr.bf16.mxu1 %v1348_v10 }
 0x115   :  { %1180 = vmatpush3.bf16.msra.mxu0 %v1349_v11  ;;  %1202 = vmatpush3.bf16.msra.mxu1 %v1350_v12 }
 0x1cb   :  { %v445_v20 = vpop.f32.mrb[4].mxu0  ;;  %v692_v22 = vpop.f32.mrb[4].mxu1 }
 0x1cc   :  { %v446_v23 = vadd.f32 %v445_v20, %v244_v15  ;;  %v693_v24 = vadd.f32 %v692_v22, %v491_v16  ;;  %v447_v25 = vpop.f32.mrb[5].mxu0  ;;  %v694_v26 = vpop.f32.mrb[5].mxu1 }
 0x1cd   :  { %v448_v27 = vadd.f32 %v447_v25, %v248_v17  ;;  %v695_v28 = vadd.f32 %v694_v26, %v495_v19  ;;  %v449_v29 = vpop.f32.mrb[6].mxu0  ;;  %v696_v30 = vpop.f32.mrb[6].mxu1 }
 0x1ce   :  { %v452_v31 = vmax.f32 %v446_v23, 0.0  ;;  %v699_v32 = vmax.f32 %v693_v24, 0.0  ;;  %v450_v33 = vpop.f32.mrb[7].mxu0  ;;  %v697_v34 = vpop.f32.mrb[7].mxu1 }
 0x1cf   :  { %v453_v35 = vmax.f32 %v448_v27, 0.0  ;;  %v700_v18 = vmax.f32 %v695_v28, 0.0 }
 0x1d0   :  { %v701_v38 = vpack.c.bf16 %v452_v31, %v452_v31  ;;  %v735_v21 = vpack.c.bf16 %v699_v32, %v699_v32 }
 0x1d1   :  { %v702_v36 = vpack.c.bf16 %v453_v35, %v453_v35  ;;  %v736_v37 = vpack.c.bf16 %v700_v18, %v700_v18 }
 0x1d3   :  { %897 = vmatprep.mubr.bf16.mxu0 %v736_v37  ;;  %1033 = vmatprep.mubr.bf16.mxu1 %v702_v36 }
 0x1d4   :  { %898 = vmatmul.mubr.bf16.vlgmr.msra.gmra.mrb[8].mxu0 %v735_v21  ;;  %1034 = vmatmul.mubr.bf16.vlgmr.msra.gmra.mrb[8].mxu1 %v701_v38 }
 0x2a7   :  { %v1181_v39 = vpop.f32.mrb[8].mxu0  ;;  %v1203_v40 = vpop.f32.mrb[8].mxu1 }
 0x2a8   :  { %v1182_v41 = vpop.f32.mrb[9].mxu0  ;;  %v1204_v42 = vpop.f32.mrb[9].mxu1 }
 0x2a9   :  { %v1183_v43 = vadd.f32 %v1182_v41, %v1181_v39  ;;  %v1205_v44 = vadd.f32 %v1204_v42, %v1203_v40  ;;  %v1184_v45 = vpop.f32.mrb[10].mxu0  ;;  %v1206_v46 = vpop.f32.mrb[10].mxu1 }
 0x2aa   :  { %v1185_v48 = vpop.f32.mrb[11].mxu0  ;;  %v1207_v49 = vpop.f32.mrb[11].mxu1 }
 0x2ab   :  { %v1036_v50 = vadd.f32 %v1205_v44, %v1183_v43 }
 0x2ad   :  { %v1048_v51 = vadd.f32 %v1164_v47, %v1036_v50 }
 0x2af   :  { %1050 = vst.msk [vmem:[%s1584_s7] sm:$0xff] %vm1049_vm2, %v1048_v51 }
 0x2b0   :  { %1055 = vsyncpa [#allocation3], 1 }

</bundles_post_ra>
